<compile_context>
chip_gen: v7x
topology: tpu7x:2x2x1
jax: 0.10.0
libtpu: 0.0.40
codegen_flags: <defaults>
</compile_context>

<pallas_src>
import functools

import jax
import jax.numpy as jnp
from jax import lax
from jax.experimental import pallas as pl
from jax.experimental.pallas import tpu as pltpu


def _affinity_kernel(a_ref, b_ref, o_ref, *, rhs_resident: bool, tn: int):
    """One (tm, tn) output tile of the affinity matrix.

    a_ref: (1, C, tm)                      -- in1 tile (channels x pixels)
    b_ref: (1, C, HW_pad) if rhs_resident  -- whole in2 slab for this batch
           (1, C, tn)     otherwise        -- in2 tile
    o_ref: (1, tm, tn)                     -- affinity tile
    """
    if rhs_resident:
        start = pl.multiple_of(pl.program_id(2) * tn, 128)
        b = b_ref[0, :, pl.ds(start, tn)]
    else:
        b = b_ref[0]
    # Transposed-LHS matmul: contract the channel (sublane) axis of both
    # operands; accumulate in f32 on the MXU, store in the output dtype.
    o_ref[0] = lax.dot_general(
        a_ref[0],
        b,
        dimension_numbers=(((0,), (0,)), ((), ())),
        preferred_element_type=jnp.float32,
    ).astype(o_ref.dtype)


def _round_up(x, m):
    return ((x + m - 1) // m) * m


def _largest_aligned_divisor(total, cap, align=128):
    """Largest multiple of `align` that divides `total` and is <= cap."""
    best = align
    t = align
    limit = min(total, cap)
    while t <= limit:
        if total % t == 0:
            best = t
        t += align
    return best


def nlm_wosoft(in1, in2):
    """affinity[n, i, j] = sum_c in1[n, c, i] * in2[n, c, j]  (i, j over H*W)."""
    n, c, h, w = in1.shape
    assert in2.shape == in1.shape, (in1.shape, in2.shape)
    hw = h * w
    dtype = jnp.result_type(in1.dtype, in2.dtype)
    itemsize = jnp.dtype(dtype).itemsize

    # Flatten spatial dims; pad the pixel axis to a multiple of 128 so every
    # block is lane-dense (unmasked vst) and block shapes divide the array.
    hw_pad = _round_up(hw, 128)
    a = in1.reshape(n, c, hw).astype(dtype)
    b = in2.reshape(n, c, hw).astype(dtype)
    if hw_pad != hw:
        pad = ((0, 0), (0, 0), (0, hw_pad - hw))
        a = jnp.pad(a, pad)
        b = jnp.pad(b, pad)

    # ---- Tile selection (generation-safe: capped for v7x's 64 MiB VMEM) ----
    OUT_BLOCK_BUDGET = 4 << 20          # 4 MiB output block -> 8 MiB double-buffered
    tn = _largest_aligned_divisor(hw_pad, 2048)
    tm_cap = max(128, OUT_BLOCK_BUDGET // (tn * itemsize))
    tm = _largest_aligned_divisor(hw_pad, min(tm_cap, 1024))

    # Keep the whole per-batch RHS resident in VMEM when it is cheap to do so;
    # otherwise fall back to per-(n-tile) RHS blocks.
    c_sub = max(_round_up(c, 8), 8)     # sublane-padded channel extent
    rhs_resident_bytes = 2 * c_sub * hw_pad * itemsize
    rhs_resident = rhs_resident_bytes <= (16 << 20)

    # VMEM footprint (double-buffered) -> explicit scoped-VMEM limit.
    out_db = 2 * tm * tn * itemsize
    lhs_db = 2 * c_sub * tm * itemsize
    rhs_db = rhs_resident_bytes if rhs_resident else 2 * c_sub * tn * itemsize
    footprint = out_db + lhs_db + rhs_db
    vmem_limit = int(min(48 << 20, max(32 << 20, footprint + (8 << 20))))

    grid = (n, hw_pad // tm, hw_pad // tn)

    if rhs_resident:
        rhs_spec = pl.BlockSpec((1, c, hw_pad), lambda bi, mi, ni: (bi, 0, 0))
    else:
        rhs_spec = pl.BlockSpec((1, c, tn), lambda bi, mi, ni: (bi, 0, ni))

    kernel = functools.partial(_affinity_kernel, rhs_resident=rhs_resident, tn=tn)

    out = pl.pallas_call(
        kernel,
        out_shape=jax.ShapeDtypeStruct((n, hw_pad, hw_pad), dtype),
        grid_spec=pltpu.PrefetchScalarGridSpec(
            num_scalar_prefetch=0,
            grid=grid,
            in_specs=[
                pl.BlockSpec((1, c, tm), lambda bi, mi, ni: (bi, 0, mi)),
                rhs_spec,
            ],
            out_specs=pl.BlockSpec((1, tm, tn), lambda bi, mi, ni: (bi, mi, ni)),
        ),
        compiler_params=pltpu.CompilerParams(
            # No reduction axis (C is untiled), so every axis is parallel;
            # on v7x Mosaic can shard a parallel axis across both TensorCores.
            dimension_semantics=("parallel", "parallel", "parallel"),
            vmem_limit_bytes=vmem_limit,
        ),
    )(a, b)

    if hw_pad != hw:
        out = out[:, :hw, :hw]
    return out


# -------- pure-JAX reference for correctness sanity checks --------
def nlm_wosoft_reference(in1, in2):
    n, c, h, w = in1.shape
    x1 = in1.reshape(n, c, h * w)
    x2 = in2.reshape(n, c, h * w)
    return jnp.einsum("nck,ncl->nkl", x1, x2)


def _check(in1, in2, tol=1e-5):
    out = jax.block_until_ready(jax.jit(nlm_wosoft)(in1, in2))
    ref = nlm_wosoft_reference(in1, in2)
    assert out.shape == ref.shape, (out.shape, ref.shape)
    err = jnp.max(jnp.abs(out - ref)) / (jnp.max(jnp.abs(ref)) + 1e-6)
    assert float(err) < tol, f"mismatch vs reference: rel err {float(err)}"
    return out


if __name__ == "__main__":
    key = jax.random.PRNGKey(0)
    k1, k2, k3, k4 = jax.random.split(key, 4)

    # Main check: shapes implied by the module (batch=2, channels=4, 16x16).
    N, C, H, W = 2, 4, 16, 16
    in1 = jax.random.normal(k1, (N, C, H, W), jnp.float32)
    in2 = jax.random.normal(k2, (N, C, H, W), jnp.float32)
    out = _check(in1, in2)
    assert out.shape == (N, H * W, H * W), out.shape

    # Secondary check: ragged HW (not a multiple of 128) exercises the
    # pad-and-slice path that replaces the old full-extent fallback block.
    in1b = jax.random.normal(k3, (1, 3, 10, 10), jnp.float32)
    in2b = jax.random.normal(k4, (1, 3, 10, 10), jnp.float32)
    _check(in1b, in2b)

    print("KERNEL_OK")
</pallas_src>

<mosaic_0001>
module attributes {stable_mosaic.version = 11 : i64} {
  func.func @_affinity_kernel(%arg0: i32, %arg1: i32, %arg2: i32, %arg3: memref<1x4x256xf32, #tpu.memory_space<vmem>>, %arg4: memref<1x4x256xf32, #tpu.memory_space<vmem>>, %arg5: memref<1x256x256xf32, #tpu.memory_space<vmem>>) attributes {dimension_semantics = [#tpu.dimension_semantics<parallel>, #tpu.dimension_semantics<parallel>, #tpu.dimension_semantics<parallel>], iteration_bounds = array<i64: 2, 1, 1>, scalar_prefetch = 0 : i64, scratch_operands = 0 : i64, tpu.core_type = #tpu.core_type<tc>, window_params = [{transform_indices = @transform_0, window_bounds = array<i64: 1, 4, 256>}, {transform_indices = @transform_1, window_bounds = array<i64: 1, 4, 256>}, {transform_indices = @transform_2, window_bounds = array<i64: 1, 256, 256>}]} {
    %c256_i32 = arith.constant 256 : i32
    %0 = arith.muli %arg2, %c256_i32 : i32
    %1 = tpu.assume_multiple %0, 128 : i32
    %c0 = arith.constant 0 : index
    %c0_0 = arith.constant 0 : index
    %2 = arith.index_cast %1 : i32 to index
    %3 = vector.load %arg4[%c0, %c0_0, %2] : memref<1x4x256xf32, #tpu.memory_space<vmem>>, vector<1x4x256xf32>
    %4 = vector.shape_cast %3 : vector<1x4x256xf32> to vector<4x256xf32>
    %c0_1 = arith.constant 0 : index
    %c0_2 = arith.constant 0 : index
    %c0_3 = arith.constant 0 : index
    %5 = vector.load %arg3[%c0_1, %c0_2, %c0_3] : memref<1x4x256xf32, #tpu.memory_space<vmem>>, vector<1x4x256xf32>
    %6 = vector.shape_cast %5 : vector<1x4x256xf32> to vector<4x256xf32>
    %cst = arith.constant dense<0.000000e+00> : vector<256x256xf32>
    %7 = tpu.matmul %6, %4, %cst {dimension_numbers = #tpu.dot_dimension_numbers<[0], [0], [1], [1], [0, 1, 1, 1], [], []>} : vector<4x256xf32>, vector<4x256xf32>, vector<256x256xf32> -> vector<256x256xf32>
    %c0_4 = arith.constant 0 : index
    %c0_5 = arith.constant 0 : index
    %c0_6 = arith.constant 0 : index
    %8 = vector.load %arg5[%c0_4, %c0_5, %c0_6] : memref<1x256x256xf32, #tpu.memory_space<vmem>>, vector<1x256x256xf32>
    %9 = vector.shape_cast %8 : vector<1x256x256xf32> to vector<256x256xf32>
    %10 = vector.shape_cast %7 : vector<256x256xf32> to vector<1x256x256xf32>
    tpu.vector_store %arg5[%c0_4, %c0_5, %c0_6], %10 {strides = array<i32>} : memref<1x256x256xf32, #tpu.memory_space<vmem>>, vector<1x256x256xf32>,
    return
  }
  func.func @transform_0(%arg0: i32, %arg1: i32, %arg2: i32) -> (i32, i32, i32) {
    %c0_i32 = arith.constant 0 : i32
    %c0_i32_0 = arith.constant 0 : i32
    return %arg0, %c0_i32, %arg1 : i32, i32, i32
  }
  func.func @transform_1(%arg0: i32, %arg1: i32, %arg2: i32) -> (i32, i32, i32) {
    %c0_i32 = arith.constant 0 : i32
    %c0_i32_0 = arith.constant 0 : i32
    %c0_i32_1 = arith.constant 0 : i32
    return %arg0, %c0_i32, %c0_i32_0 : i32, i32, i32
  }
  func.func @transform_2(%arg0: i32, %arg1: i32, %arg2: i32) -> (i32, i32, i32) {
    %c0_i32 = arith.constant 0 : i32
    return %arg0, %arg1, %arg2 : i32, i32, i32
  }
}

</mosaic_0001>

<bundles_post_ra>
// kernel: nlm_wosoft.1
= control target key start
LH: loop header
LB: loop body
LE: loop exit
PB: predicated region body
PF: predicated region fallthrough
CT: control target
= control target key end

     0   :  { %7 = vsyncpa [#allocation3], 0  ;;  %s1285_s0 = inlined_call_operand.vmem [shape: f32[2,4,256], index: 0, kind: input, shape index: {}]   ;;  %s1286_s1 = inlined_call_operand.vmem [shape: f32[2,4,256], index: 1, kind: input, shape index: {}]   ;;  %s1287_s2 = inlined_call_operand.hbm [shape: f32[2,256,256], index: 2, kind: output, shape index: {}]  }
   0x1   :  { %9 = vsyncpa [#allocation3 + $0x1], 0  ;;  %s1032_s9 = smov 0   ;;  %s1034_s10 = smov 0  }
   0x2   :  { %s1036_s11 = smov 0   ;;  %s1038_s12 = smov 0  }
   0x3   :  { %s1040_s13 = smov 0   ;;  %s1042_s14 = smov 0  }
   0x4 LB: > { %s819_s15 = sadd.s32 4294967295, %s1011_s14   ;;  %s820_s16 = sadd.s32 4294967294, %s1011_s14   ;;  %s1011_s14 = sphi %s1042_s14, %s15_s14   ;;  %s1007_s13 = sphi %s1040_s13, %s1294_s13   ;;  %s1003_s12 = sphi %s1038_s12, %s1293_s12   ;;  %s999_s11 = sphi %s1036_s11, %s1292_s11   ;;  %s995_s10 = sphi %s1034_s10, %s1291_s10   ;;  %s991_s9 = sphi %s1032_s9, %s1290_s9  }
   0x5   : > { %s34_s17 = sadd.s32 1, %s1007_s13  ;;  %s99_s18 = sadd.s32 1, %s999_s11 }
   0x6   : > { %p36_p0 = scmp.ge.s32.totalorder %s34_s17, 2  ;;  %p109_p1 = scmp.ne.s32.totalorder %s999_s11, %s995_s10 }
   0x7   : > { %p110_p2 = scmp.eq.s32.totalorder %s819_s15, 1  ;;  %p115_p3 = scmp.ne.s32.totalorder %s995_s10, %s991_s9 }
   0x8   : > { %s1296_s17 = smov (%p36_p0, %s34_s17), 0  ;;  %p116_p5 = scmp.eq.s32.totalorder %s820_s16, 1 }
   0x9   : > { %p1072_p4 = por %p110_p2, %p109_p1  ;;  %s92_s20 = ssub.s32 %s1007_s13, %s1296_s17 }
   0xa   : > { %p823_p6 = scmp.ge.s32.totalorder %s1011_s14, 1  ;;  %p97_p7 = scmp.eq.s32.totalorder %s92_s20, 0 }
   0xb   : > { %p1079_p8 = por %p116_p5, %p115_p3  ;;  %p155_p9 = scmp.lt.s32.totalorder %s1011_s14, 3 }
   0xc   : > { %s1085_s22 = scalar_select %p97_p7, %s999_s11, %s99_s18  }
   0xd   : > { %p156_p10 = pnand %p823_p6, %p155_p9 }
   0xe   : > { %p187_p11 = scmp.lt.s32.totalorder (!%p156_p10), %s1003_s12, 1  ;;  %v1013_v0 = vmov (!%p156_p10), 0.0   ;;  %vm376_vm0 = vcmask (!%p156_p10), 1043456   ;;  %vm279_vm1 = vcmask (!%p156_p10), 31744   ;;  %s183_s3 = sand.u32 (!%p156_p10), 1, %s995_s10  }
   0xf   : > { %159 = sbr.rel (%p156_p10) target bundleno = 509 (0x1fd), region = 28  ;;  %445 = vmatprep.mubr.f32.mxu0 (!%p156_p10), %v1013_v0  ;;  %541 = vmatprep.mubr.f32.mxu1 (!%p156_p10), %v1013_v0  ;;  %s824_s4 = sshll.u32 (!%p156_p10), %s183_s3, 9 }
  0x10   : > { %s1162_s5 = scalar_lea.vmem (!%p156_p10), [#allocation2], %s824_s4  ;;  %s870_s6 = sshll.u32 (!%p156_p10), %s1003_s12, 13 }
  0x11   : > { %s721_s7 = sshll.u32 (!%p156_p10), %s1162_s5, 4  ;;  %s1231_s16 = scalar_lea.hbm (!%p156_p10), %s1287_s2, %s870_s6  ;;  %s1233_s7 = int_to_ptr.vmem [resolvable:$true] %s721_s7 }
  0x12   : > { %s933_s18 = scalar_lea.vmem (!%p156_p10), %s1233_s7, 8192  ;;  %s1014_s20 = smov (!%p156_p10), [#allocation2]  }
  0x13   : > { %p934_p12 = scmp.ne.s32.totalorder (!%p156_p10), %s1233_s7, %s933_s18 }
  0x15   : > { %p935_p13 = pnand (!%p156_p10), %p934_p12, %p1072_p4 }
  0x16   : > { %s188_s23 = scalar_select %p187_p11, %s1003_s12, 1 }
  0x17   : > { %s1239_s12 = scalar_lea.sflag [#allocation3], %s183_s3  ;;  %p936_p0 = pneg %p935_p13 }
  0x18   : > { %s868_s24 = sshll.u32 %s188_s23, 3  ;;  %s937_s23 = sshll.u32 %s1014_s20, 4  ;;  %s938_s23 = int_to_ptr.vmem [resolvable:$false] %s937_s23 }
  0x19   : > { %s194_s27 = scalar_lea.vmem %s1285_s0, %s868_s24  ;;  %s200_s30 = scalar_lea.vmem %s1286_s1, %s868_s24 }
  0x1a   : > { %v208_v1 = vld [vmem:[%s200_s30] sm:$0xff]  ;;  %s939_s24 = scalar_lea.vmem %s938_s23, 16384  ;;  %p940_p1 = scmp.lt.s32.totalorder %s1233_s7, %s938_s23 }
  0x1b   : > { %v209_v2 = vld [vmem:[%s194_s27] sm:$0xff]  ;;  %v278_v3 = vcombine.high %v208_v1, %v208_v1  ;;  %p941_p2 = scmp.lt.s32.totalorder %s939_s24, %s933_s18 }
  0x1c   : > { %213 = vxpose.xlu0.b32.start.end [1/1] (short) %v209_v2, 128  ;;  %v211_v4 = vcombine.high %v209_v2, %v209_v2 }
  0x1d   : > { %829 = vmatprep.subr.msk.mxu0 %vm376_vm0, %v278_v3  ;;  %871 = vmatprep.subr.msk.mxu1 %vm376_vm0, %v278_v3  ;;  %p942_p3 = por %p941_p2, %p940_p1 }
  0x1e   : > { %830 = vmatpush1.msk.msra.mxu0 %vm376_vm0, %v208_v1  ;;  %872 = vmatpush1.msk.msra.mxu1 %vm376_vm0, %v208_v1 }
  0x1f   : > { %p943_p5 = pnand %p942_p3, %p936_p0 }
  0x59   : > { %245 = vxpose.xlu0.b32.start.end [1/1] (short) %v211_v4, 128 }
  0x9c   : > { %v229_v5 = vpop.trf.xlu0 }
  0x9d   : > { %831 = vmatmul.mubr.msk.f32.vlgmr.msra.gmra.mrb[0].mxu0 %vm279_vm1, %v229_v5 }
  0x9e   : > { %451 = vmatprep.mubr.f32.mxu0 %v1013_v0 }
  0xa0   : > { %v230_v6 = vpop.trf.xlu0 }
  0xa1   : > { %832 = vmatmul.mubr.msk.f32.gmra.mrb[2].mxu0 %vm279_vm1, %v230_v6 }
  0xa2   : > { %457 = vmatprep.mubr.f32.mxu0 %v1013_v0 }
  0xa4   : > { %v231_v7 = vpop.trf.xlu0 }
  0xa5   : > { %833 = vmatmul.mubr.msk.f32.gmra.mrb[4].mxu0 %vm279_vm1, %v231_v7 }
  0xa6   : > { %463 = vmatprep.mubr.f32.mxu0 %v1013_v0 }
  0xa8   : > { %v232_v8 = vpop.trf.xlu0 }
  0xa9   : > { %834 = vmatmul.mubr.msk.f32.gmra.mrb[6].mxu0 %vm279_vm1, %v232_v8 }
  0xaa   : > { %469 = vmatprep.mubr.f32.mxu0 %v1013_v0 }
  0xac   : > { %v233_v9 = vpop.trf.xlu0 }
  0xad   : > { %835 = vmatmul.mubr.msk.f32.gmra.mrb[8].mxu0 %vm279_vm1, %v233_v9 }
  0xae   : > { %475 = vmatprep.mubr.f32.mxu0 %v1013_v0 }
  0xb0   : > { %v234_v10 = vpop.trf.xlu0 }
  0xb1   : > { %836 = vmatmul.mubr.msk.f32.gmra.mrb[10].mxu0 %vm279_vm1, %v234_v10 }
  0xb2   : > { %481 = vmatprep.mubr.f32.mxu0 %v1013_v0 }
  0xb4   : > { %v235_v11 = vpop.trf.xlu0 }
  0xb5   : > { %837 = vmatmul.mubr.msk.f32.gmra.mrb[12].mxu0 %vm279_vm1, %v235_v11 }
  0xb6   : > { %487 = vmatprep.mubr.f32.mxu0 %v1013_v0 }
  0xb8   : > { %v236_v12 = vpop.trf.xlu0 }
  0xb9   : > { %838 = vmatmul.mubr.msk.f32.gmra.mrb[14].mxu0 %vm279_vm1, %v236_v12 }
  0xba   : > { %493 = vmatprep.mubr.f32.mxu0 %v1013_v0 }
  0xbc   : > { %v237_v13 = vpop.trf.xlu0 }
  0xbd   : > { %839 = vmatmul.mubr.msk.f32.gmra.mrb[16].mxu0 %vm279_vm1, %v237_v13 }
  0xbe   : > { %499 = vmatprep.mubr.f32.mxu0 %v1013_v0 }
  0xc0   : > { %v238_v14 = vpop.trf.xlu0 }
  0xc1   : > { %840 = vmatmul.mubr.msk.f32.gmra.mrb[18].mxu0 %vm279_vm1, %v238_v14 }
  0xc2   : > { %505 = vmatprep.mubr.f32.mxu0 %v1013_v0 }
  0xc4   : > { %v239_v15 = vpop.trf.xlu0 }
  0xc5   : > { %841 = vmatmul.mubr.msk.f32.gmra.mrb[20].mxu0 %vm279_vm1, %v239_v15 }
  0xc6   : > { %511 = vmatprep.mubr.f32.mxu0 %v1013_v0 }
  0xc8   : > { %v240_v16 = vpop.trf.xlu0 }
  0xc9   : > { %842 = vmatmul.mubr.msk.f32.gmra.mrb[22].mxu0 %vm279_vm1, %v240_v16 }
  0xca   : > { %517 = vmatprep.mubr.f32.mxu0 %v1013_v0 }
  0xcc   : > { %v241_v17 = vpop.trf.xlu0 }
  0xcd   : > { %843 = vmatmul.mubr.msk.f32.gmra.mrb[24].mxu0 %vm279_vm1, %v241_v17 }
  0xce   : > { %523 = vmatprep.mubr.f32.mxu0 %v1013_v0 }
  0xd0   : > { %v242_v18 = vpop.trf.xlu0 }
  0xd1   : > { %844 = vmatmul.mubr.msk.f32.gmra.mrb[26].mxu0 %vm279_vm1, %v242_v18 }
  0xd2   : > { %529 = vmatprep.mubr.f32.mxu0 %v1013_v0 }
  0xd4   : > { %v243_v19 = vpop.trf.xlu0 }
  0xd5   : > { %845 = vmatmul.mubr.msk.f32.gmra.mrb[28].mxu0 %vm279_vm1, %v243_v19 }
  0xd6   : > { %535 = vmatprep.mubr.f32.mxu0 %v1013_v0 }
  0xd8   : > { %v244_v20 = vpop.trf.xlu0 }
  0xd9   : > { %846 = vmatmul.mubr.msk.f32.gmra.mrb[30].mxu0 %vm279_vm1, %v244_v20 }
  0xdc   : > { %v261_v21 = vpop.trf.xlu0 }
  0xdd   : > { %847 = vmatmul.mubr.msk.f32.vlgmr.msra.gmra.mrb[0].mxu1 %vm279_vm1, %v261_v21 }
  0xde   : > { %547 = vmatprep.mubr.f32.mxu1 %v1013_v0 }
  0xe0   : > { %v262_v22 = vpop.trf.xlu0 }
  0xe1   : > { %848 = vmatmul.mubr.msk.f32.gmra.mrb[2].mxu1 %vm279_vm1, %v262_v22 }
  0xe2   : > { %553 = vmatprep.mubr.f32.mxu1 %v1013_v0 }
  0xe4   : > { %v263_v23 = vpop.trf.xlu0 }
  0xe5   : > { %849 = vmatmul.mubr.msk.f32.gmra.mrb[4].mxu1 %vm279_vm1, %v263_v23 }
  0xe6   : > { %559 = vmatprep.mubr.f32.mxu1 %v1013_v0 }
  0xe8   : > { %v264_v24 = vpop.trf.xlu0 }
  0xe9   : > { %850 = vmatmul.mubr.msk.f32.gmra.mrb[6].mxu1 %vm279_vm1, %v264_v24 }
  0xea   : > { %565 = vmatprep.mubr.f32.mxu1 %v1013_v0 }
  0xec   : > { %v265_v25 = vpop.trf.xlu0 }
  0xed   : > { %851 = vmatmul.mubr.msk.f32.gmra.mrb[8].mxu1 %vm279_vm1, %v265_v25 }
  0xee   : > { %571 = vmatprep.mubr.f32.mxu1 %v1013_v0 }
  0xf0   : > { %v266_v26 = vpop.trf.xlu0 }
  0xf1   : > { %852 = vmatmul.mubr.msk.f32.gmra.mrb[10].mxu1 %vm279_vm1, %v266_v26 }
  0xf2   : > { %577 = vmatprep.mubr.f32.mxu1 %v1013_v0 }
  0xf4   : > { %v267_v27 = vpop.trf.xlu0 }
  0xf5   : > { %853 = vmatmul.mubr.msk.f32.gmra.mrb[12].mxu1 %vm279_vm1, %v267_v27 }
  0xf6   : > { %583 = vmatprep.mubr.f32.mxu1 %v1013_v0 }
  0xf8   : > { %v268_v28 = vpop.trf.xlu0 }
  0xf9   : > { %854 = vmatmul.mubr.msk.f32.gmra.mrb[14].mxu1 %vm279_vm1, %v268_v28 }
  0xfa   : > { %589 = vmatprep.mubr.f32.mxu1 %v1013_v0 }
  0xfc   : > { %v269_v29 = vpop.trf.xlu0 }
  0xfd   : > { %855 = vmatmul.mubr.msk.f32.gmra.mrb[16].mxu1 %vm279_vm1, %v269_v29 }
  0xfe   : > { %595 = vmatprep.mubr.f32.mxu1 %v1013_v0 }
 0x100   : > { %v270_v30 = vpop.trf.xlu0 }
 0x101   : > { %856 = vmatmul.mubr.msk.f32.gmra.mrb[18].mxu1 %vm279_vm1, %v270_v30 }
 0x102   : > { %601 = vmatprep.mubr.f32.mxu1 %v1013_v0 }
 0x104   : > { %v271_v31 = vpop.trf.xlu0 }
 0x105   : > { %857 = vmatmul.mubr.msk.f32.gmra.mrb[20].mxu1 %vm279_vm1, %v271_v31 }
 0x106   : > { %607 = vmatprep.mubr.f32.mxu1 %v1013_v0 }
 0x108   : > { %v272_v32 = vpop.trf.xlu0 }
 0x109   : > { %858 = vmatmul.mubr.msk.f32.gmra.mrb[22].mxu1 %vm279_vm1, %v272_v32 }
 0x10a   : > { %613 = vmatprep.mubr.f32.mxu1 %v1013_v0 }
 0x10c   : > { %v273_v33 = vpop.trf.xlu0 }
 0x10d   : > { %859 = vmatmul.mubr.msk.f32.gmra.mrb[24].mxu1 %vm279_vm1, %v273_v33 }
 0x10e   : > { %619 = vmatprep.mubr.f32.mxu1 %v1013_v0 }
 0x110   : > { %v274_v34 = vpop.trf.xlu0 }
 0x111   : > { %860 = vmatmul.mubr.msk.f32.gmra.mrb[26].mxu1 %vm279_vm1, %v274_v34 }
 0x112   : > { %625 = vmatprep.mubr.f32.mxu1 %v1013_v0 }
 0x114   : > { %v275_v35 = vpop.trf.xlu0 }
 0x115   : > { %861 = vmatmul.mubr.msk.f32.gmra.mrb[28].mxu1 %vm279_vm1, %v275_v35 }
 0x116   : > { %631 = vmatprep.mubr.f32.mxu1 %v1013_v0 }
 0x118   : > { %v276_v36 = vpop.trf.xlu0 }
 0x119   : > { %862 = vmatmul.mubr.msk.f32.gmra.mrb[30].mxu1 %vm279_vm1, %v276_v36 }
 0x170   : > { %v447_v37 = vpop.f32.mrb[0].mxu0 }
 0x171   : > { %638 = vst [vmem:[%s1162_s5] sm:$0xff] %v447_v37  ;;  %v449_v38 = vpop.f32.mrb[1].mxu0 }
 0x172   : > { %639 = vst [vmem:[%s1162_s5 + $0x8] sm:$0xff] %v449_v38 }
 0x174   : > { %v453_v39 = vpop.f32.mrb[2].mxu0 }
 0x175   : > { %640 = vst [vmem:[%s1162_s5 + $0x10] sm:$0xff] %v453_v39  ;;  %v455_v40 = vpop.f32.mrb[3].mxu0 }
 0x176   : > { %641 = vst [vmem:[%s1162_s5 + $0x18] sm:$0xff] %v455_v40 }
 0x178   : > { %v459_v41 = vpop.f32.mrb[4].mxu0 }
 0x179   : > { %642 = vst [vmem:[%s1162_s5 + $0x20] sm:$0xff] %v459_v41  ;;  %v461_v42 = vpop.f32.mrb[5].mxu0 }
 0x17a   : > { %643 = vst [vmem:[%s1162_s5 + $0x28] sm:$0xff] %v461_v42 }
 0x17c   : > { %v465_v43 = vpop.f32.mrb[6].mxu0 }
 0x17d   : > { %644 = vst [vmem:[%s1162_s5 + $0x30] sm:$0xff] %v465_v43  ;;  %v467_v44 = vpop.f32.mrb[7].mxu0 }
 0x17e   : > { %645 = vst [vmem:[%s1162_s5 + $0x38] sm:$0xff] %v467_v44 }
 0x180   : > { %v471_v45 = vpop.f32.mrb[8].mxu0 }
 0x181   : > { %646 = vst [vmem:[%s1162_s5 + $0x40] sm:$0xff] %v471_v45  ;;  %v473_v46 = vpop.f32.mrb[9].mxu0 }
 0x182   : > { %647 = vst [vmem:[%s1162_s5 + $0x48] sm:$0xff] %v473_v46 }
 0x184   : > { %v477_v47 = vpop.f32.mrb[10].mxu0 }
 0x185   : > { %648 = vst [vmem:[%s1162_s5 + $0x50] sm:$0xff] %v477_v47  ;;  %v479_v48 = vpop.f32.mrb[11].mxu0 }
 0x186   : > { %649 = vst [vmem:[%s1162_s5 + $0x58] sm:$0xff] %v479_v48 }
 0x188   : > { %v483_v49 = vpop.f32.mrb[12].mxu0 }
 0x189   : > { %650 = vst [vmem:[%s1162_s5 + $0x60] sm:$0xff] %v483_v49  ;;  %v485_v50 = vpop.f32.mrb[13].mxu0 }
 0x18a   : > { %651 = vst [vmem:[%s1162_s5 + $0x68] sm:$0xff] %v485_v50 }
 0x18c   : > { %v489_v51 = vpop.f32.mrb[14].mxu0 }
 0x18d   : > { %652 = vst [vmem:[%s1162_s5 + $0x70] sm:$0xff] %v489_v51  ;;  %v491_v52 = vpop.f32.mrb[15].mxu0 }
 0x18e   : > { %653 = vst [vmem:[%s1162_s5 + $0x78] sm:$0xff] %v491_v52 }
 0x190   : > { %v495_v53 = vpop.f32.mrb[16].mxu0 }
 0x191   : > { %654 = vst [vmem:[%s1162_s5 + $0x80] sm:$0xff] %v495_v53  ;;  %v497_v54 = vpop.f32.mrb[17].mxu0 }
 0x192   : > { %655 = vst [vmem:[%s1162_s5 + $0x88] sm:$0xff] %v497_v54 }
 0x194   : > { %v501_v55 = vpop.f32.mrb[18].mxu0 }
 0x195   : > { %656 = vst [vmem:[%s1162_s5 + $0x90] sm:$0xff] %v501_v55  ;;  %v503_v56 = vpop.f32.mrb[19].mxu0 }
 0x196   : > { %657 = vst [vmem:[%s1162_s5 + $0x98] sm:$0xff] %v503_v56 }
 0x198   : > { %v507_v57 = vpop.f32.mrb[20].mxu0 }
 0x199   : > { %658 = vst [vmem:[%s1162_s5 + $0xa0] sm:$0xff] %v507_v57  ;;  %v509_v58 = vpop.f32.mrb[21].mxu0 }
 0x19a   : > { %659 = vst [vmem:[%s1162_s5 + $0xa8] sm:$0xff] %v509_v58 }
 0x19c   : > { %v513_v59 = vpop.f32.mrb[22].mxu0 }
 0x19d   : > { %660 = vst [vmem:[%s1162_s5 + $0xb0] sm:$0xff] %v513_v59  ;;  %v515_v60 = vpop.f32.mrb[23].mxu0 }
 0x19e   : > { %661 = vst [vmem:[%s1162_s5 + $0xb8] sm:$0xff] %v515_v60 }
 0x1a0   : > { %v519_v61 = vpop.f32.mrb[24].mxu0 }
 0x1a1   : > { %662 = vst [vmem:[%s1162_s5 + $0xc0] sm:$0xff] %v519_v61  ;;  %v521_v62 = vpop.f32.mrb[25].mxu0 }
 0x1a2   : > { %663 = vst [vmem:[%s1162_s5 + $0xc8] sm:$0xff] %v521_v62 }
 0x1a4   : > { %v525_v63 = vpop.f32.mrb[26].mxu0 }
 0x1a5   : > { %664 = vst [vmem:[%s1162_s5 + $0xd0] sm:$0xff] %v525_v63  ;;  %v527_v0 = vpop.f32.mrb[27].mxu0 }
 0x1a6   : > { %665 = vst [vmem:[%s1162_s5 + $0xd8] sm:$0xff] %v527_v0 }
 0x1a8   : > { %v531_v1 = vpop.f32.mrb[28].mxu0 }
 0x1a9   : > { %666 = vst [vmem:[%s1162_s5 + $0xe0] sm:$0xff] %v531_v1  ;;  %v533_v2 = vpop.f32.mrb[29].mxu0 }
 0x1aa   : > { %667 = vst [vmem:[%s1162_s5 + $0xe8] sm:$0xff] %v533_v2 }
 0x1ac   : > { %v537_v3 = vpop.f32.mrb[30].mxu0 }
 0x1ad   : > { %668 = vst [vmem:[%s1162_s5 + $0xf0] sm:$0xff] %v537_v3  ;;  %v539_v4 = vpop.f32.mrb[31].mxu0 }
 0x1ae   : > { %669 = vst [vmem:[%s1162_s5 + $0xf8] sm:$0xff] %v539_v4 }
 0x1b0   : > { %v543_v5 = vpop.f32.mrb[0].mxu1 }
 0x1b1   : > { %670 = vst [vmem:[%s1162_s5 + $0x100] sm:$0xff] %v543_v5  ;;  %v545_v6 = vpop.f32.mrb[1].mxu1 }
 0x1b2   : > { %671 = vst [vmem:[%s1162_s5 + $0x108] sm:$0xff] %v545_v6 }
 0x1b4   : > { %v549_v7 = vpop.f32.mrb[2].mxu1 }
 0x1b5   : > { %672 = vst [vmem:[%s1162_s5 + $0x110] sm:$0xff] %v549_v7  ;;  %v551_v8 = vpop.f32.mrb[3].mxu1 }
 0x1b6   : > { %673 = vst [vmem:[%s1162_s5 + $0x118] sm:$0xff] %v551_v8 }
 0x1b8   : > { %v555_v9 = vpop.f32.mrb[4].mxu1 }
 0x1b9   : > { %674 = vst [vmem:[%s1162_s5 + $0x120] sm:$0xff] %v555_v9  ;;  %v557_v10 = vpop.f32.mrb[5].mxu1 }
 0x1ba   : > { %675 = vst [vmem:[%s1162_s5 + $0x128] sm:$0xff] %v557_v10 }
 0x1bc   : > { %v561_v11 = vpop.f32.mrb[6].mxu1 }
 0x1bd   : > { %676 = vst [vmem:[%s1162_s5 + $0x130] sm:$0xff] %v561_v11  ;;  %v563_v12 = vpop.f32.mrb[7].mxu1 }
 0x1be   : > { %677 = vst [vmem:[%s1162_s5 + $0x138] sm:$0xff] %v563_v12 }
 0x1c0   : > { %v567_v13 = vpop.f32.mrb[8].mxu1 }
 0x1c1   : > { %678 = vst [vmem:[%s1162_s5 + $0x140] sm:$0xff] %v567_v13  ;;  %v569_v14 = vpop.f32.mrb[9].mxu1 }
 0x1c2   : > { %679 = vst [vmem:[%s1162_s5 + $0x148] sm:$0xff] %v569_v14 }
 0x1c4   : > { %v573_v15 = vpop.f32.mrb[10].mxu1 }
 0x1c5   : > { %680 = vst [vmem:[%s1162_s5 + $0x150] sm:$0xff] %v573_v15  ;;  %v575_v16 = vpop.f32.mrb[11].mxu1 }
 0x1c6   : > { %681 = vst [vmem:[%s1162_s5 + $0x158] sm:$0xff] %v575_v16 }
 0x1c8   : > { %v579_v17 = vpop.f32.mrb[12].mxu1 }
 0x1c9   : > { %682 = vst [vmem:[%s1162_s5 + $0x160] sm:$0xff] %v579_v17  ;;  %v581_v18 = vpop.f32.mrb[13].mxu1 }
 0x1ca   : > { %683 = vst [vmem:[%s1162_s5 + $0x168] sm:$0xff] %v581_v18 }
 0x1cc   : > { %v585_v19 = vpop.f32.mrb[14].mxu1 }
 0x1cd   : > { %684 = vst [vmem:[%s1162_s5 + $0x170] sm:$0xff] %v585_v19  ;;  %v587_v20 = vpop.f32.mrb[15].mxu1 }
 0x1ce   : > { %685 = vst [vmem:[%s1162_s5 + $0x178] sm:$0xff] %v587_v20 }
 0x1d0   : > { %v591_v21 = vpop.f32.mrb[16].mxu1 }
 0x1d1   : > { %686 = vst [vmem:[%s1162_s5 + $0x180] sm:$0xff] %v591_v21  ;;  %v593_v22 = vpop.f32.mrb[17].mxu1 }
 0x1d2   : > { %687 = vst [vmem:[%s1162_s5 + $0x188] sm:$0xff] %v593_v22 }
 0x1d4   : > { %v597_v23 = vpop.f32.mrb[18].mxu1 }
 0x1d5   : > { %688 = vst [vmem:[%s1162_s5 + $0x190] sm:$0xff] %v597_v23  ;;  %v599_v24 = vpop.f32.mrb[19].mxu1 }
 0x1d6   : > { %689 = vst [vmem:[%s1162_s5 + $0x198] sm:$0xff] %v599_v24 }
 0x1d8   : > { %v603_v25 = vpop.f32.mrb[20].mxu1 }
 0x1d9   : > { %690 = vst [vmem:[%s1162_s5 + $0x1a0] sm:$0xff] %v603_v25  ;;  %v605_v26 = vpop.f32.mrb[21].mxu1 }
 0x1da   : > { %691 = vst [vmem:[%s1162_s5 + $0x1a8] sm:$0xff] %v605_v26 }
 0x1dc   : > { %v609_v27 = vpop.f32.mrb[22].mxu1 }
 0x1dd   : > { %692 = vst [vmem:[%s1162_s5 + $0x1b0] sm:$0xff] %v609_v27  ;;  %v611_v28 = vpop.f32.mrb[23].mxu1 }
 0x1de   : > { %693 = vst [vmem:[%s1162_s5 + $0x1b8] sm:$0xff] %v611_v28 }
 0x1e0   : > { %v615_v29 = vpop.f32.mrb[24].mxu1 }
 0x1e1   : > { %694 = vst [vmem:[%s1162_s5 + $0x1c0] sm:$0xff] %v615_v29  ;;  %v617_v30 = vpop.f32.mrb[25].mxu1 }
 0x1e2   : > { %695 = vst [vmem:[%s1162_s5 + $0x1c8] sm:$0xff] %v617_v30 }
 0x1e4   : > { %v621_v31 = vpop.f32.mrb[26].mxu1 }
 0x1e5   : > { %696 = vst [vmem:[%s1162_s5 + $0x1d0] sm:$0xff] %v621_v31  ;;  %v623_v32 = vpop.f32.mrb[27].mxu1 }
 0x1e6   : > { %697 = vst [vmem:[%s1162_s5 + $0x1d8] sm:$0xff] %v623_v32 }
 0x1e8   : > { %v627_v33 = vpop.f32.mrb[28].mxu1 }
 0x1e9   : > { %698 = vst [vmem:[%s1162_s5 + $0x1e0] sm:$0xff] %v627_v33  ;;  %v629_v34 = vpop.f32.mrb[29].mxu1 }
 0x1ea   : > { %699 = vst [vmem:[%s1162_s5 + $0x1e8] sm:$0xff] %v629_v34 }
 0x1ec   : > { %v633_v35 = vpop.f32.mrb[30].mxu1 }
 0x1ed   : > { %700 = vst [vmem:[%s1162_s5 + $0x1f0] sm:$0xff] %v633_v35  ;;  %v635_v36 = vpop.f32.mrb[31].mxu1 }
 0x1ee   : > { %701 = vst [vmem:[%s1162_s5 + $0x1f8] sm:$0xff] %v635_v36 }
 0x1ef   : > { %946 = shalt.err (!%p943_p5)
}
 0x1f0   : > { %s947_s25 = scalar_lea.hbm %s1231_s16, 8192  ;;  %s951_s28 = scalar_lea.hbm %s1287_s2, 16384 }
 0x1f1   : > { %p948_p6 = scmp.ne.s32.totalorder %s1231_s16, %s947_s25  ;;  %p952_p10 = scmp.lt.u32.totalorder %s1231_s16, %s1287_s2 }
 0x1f2   : > { %p953_p11 = scmp.lt.u32.totalorder %s951_s28, %s947_s25  ;;  %p955_p13 = scmp.lt.u32.totalorder %s947_s25, %s1231_s16 }
 0x1f3   : > { %p949_p7 = pnand %p948_p6, %p1072_p4 }
 0x1f4   : > { %p954_p12 = por %p953_p11, %p952_p10 }
 0x1f5   : > { %p950_p9 = pneg %p949_p7 }
 0x1f6   : > { %p956_p0 = por %p955_p13, %p954_p12 }
 0x1f8   : > { %p957_p1 = pnand %p956_p0, %p950_p9 }
 0x1fa   : > { %960 = shalt.err (!%p957_p1)
}
 0x1fb   : > { %s1015_s3 = smov 256   ;;  %s1016_s4 = smov 16  }
 0x1fc   : > { %873 = dma.vmem_to_hbm [thread:$0]  (%p1072_p4), %s1233_s7, 8192, %s1231_s16, %s1239_s12, %s1015_s3, %s1015_s3, %s1016_s4  }
 0x1fd PF: > { %p879_p2 = scmp.ge.s32.totalorder %s1011_s14, 2  ;;  %s736_s5 = sand.u32 1, %s991_s9  }
 0x1fe   : > { %s737_s6 = scalar_lea.sflag [#allocation3], %s736_s5 }
 0x1ff   : > { %p876_p3 = pnand %p879_p2, %p1079_p8 }
 0x201   : > { %986 = dma.done.wait (!%p876_p3), %s737_s6, 8192  }
 0x202   : > { %988 = vsyncadd (!%p876_p3), %s737_s6, 4294959104  ;;  %s15_s14 = sadd.s32 1, %s1011_s14   ;;  %s1290_s9 = smov %s995_s10 }
 0x203   : > { %p12_p5 = scmp.ge.s32.totalorder %s15_s14, 4   ;;  %s1291_s10 = smov %s999_s11 }
 0x204   : > { %s1292_s11 = smov %s1085_s22  ;;  %s1293_s12 = smov %s1007_s13 }
 0x205   : > { %s1294_s13 = smov %s1296_s17  ;;  %14 = sbr.rel (!%p12_p5) target bundleno = 4 (0x4), region = 67 }
 0x20c   :  { %742 = vsyncpa [#allocation3], 1 }
 0x20d   :  { %744 = vsyncpa [#allocation3 + $0x1], 1 }

</bundles_post_ra>
